<compile_context>
chip_gen: v7x
topology: tpu7x:2x2x1
jax: 0.10.0
libtpu: 0.0.40
codegen_flags: <defaults>
</compile_context>

<pallas_src>
import jax
import jax.numpy as jnp
from jax import lax
from jax.experimental import pallas as pl
from jax.experimental.pallas import tpu as pltpu


# ----------------------------------------------------------------------------
# Fused Pallas kernel
# ----------------------------------------------------------------------------

def _normalize_last(x):
    # F.normalize(x, dim=-1, eps=1e-12)  ==  x * rsqrt(max(||x||^2, 1e-24))
    # (eps applied to the squared norm preserves the clamp-on-norm semantics;
    #  rsqrt lowers to the EUP, which is otherwise idle here.)
    return x * lax.rsqrt(jnp.maximum(jnp.sum(x * x, axis=-1, keepdims=True), 1e-24))


def fused_prompt_kernel(te_ref, td_ref, g_ref, v2_ref, wcat_ref, b_ref, ut_ref,
                        comb_ref, up_ref):
    """Fused hot path for a batch block of BB elements.

    te_ref   : (BB, K, D)    text embeddings (f32)
    td_ref   : (BB, K, D)    text diff from context decoder (f32)
    g_ref    : (1, D)        gamma (f32)
    v2_ref   : (BB, P, Cv)   stage-3 visual tokens (bf16)
    wcat_ref : (Cv, 2D)      [aux_w | dec_w] concatenated (bf16)
    b_ref    : (1, D)        aux_linear bias (f32)
    ut_ref   : (P, Ho*Wo)    kron(ah, aw)^T bilinear-x4 operator (bf16, exact)
    comb_ref : (BB, K, 2P)   combined score maps, lanes [0:P]=dec, [P:2P]=aux/low
    up_ref   : (BB*K, Ho*Wo) upsampled dec score map, flattened spatial (f32)
    """
    BB, K, D = te_ref.shape
    P = v2_ref.shape[1]

    # --- t = text_embeddings + gamma * text_diff ; L2-normalize (dim=-1) ---
    g = g_ref[...].reshape(1, 1, D)
    t = te_ref[...] + g * td_ref[...]                                  # (BB, K, D)
    tn = _normalize_last(t).astype(jnp.bfloat16)                       # (BB, K, D)

    # --- fused aux_linear / decoder projection; batch folded into M rows ---
    v2 = v2_ref[...].reshape(BB * P, -1)                               # (BB*P, Cv)
    vcat = jnp.dot(v2, wcat_ref[...],
                   preferred_element_type=jnp.float32)                 # (BB*P, 2D)
    v_low = vcat[:, :D] + b_ref[...]                                   # aux_linear
    v_dec = vcat[:, D:]                                                # dec proj
    vln = _normalize_last(v_low).reshape(BB, P, D)                     # (BB, P, D)
    vdn = _normalize_last(v_dec).reshape(BB, P, D)                     # (BB, P, D)

    # --- ONE fused score matmul per batch: rows [0:P]=dec, [P:2P]=aux/low ---
    vn = jnp.concatenate([vdn, vln], axis=1).astype(jnp.bfloat16)      # (BB, 2P, D)
    if BB == 1:
        sc2 = lax.dot_general(tn.reshape(K, D), vn.reshape(2 * P, D),
                              (((1,), (1,)), ((), ())),
                              preferred_element_type=jnp.float32)      # (K, 2P)
        scores = sc2.reshape(1, K, 2 * P)
    else:
        scores = lax.dot_general(tn, vn, (((2,), (2,)), ((0,), (0,))),
                                 preferred_element_type=jnp.float32)   # (BB, K, 2P)
    comb_ref[...] = scores                                             # lane-dense

    # --- fused bilinear x4 upsample of the dec score map ---
    hi = scores[:, :, :P].reshape(BB * K, P).astype(jnp.bfloat16)      # (BB*K, P)
    up_ref[...] = jnp.dot(hi, ut_ref[...],
                          preferred_element_type=jnp.float32)          # (BB*K, HoWo)


def _batch_block_for_device(B):
    """v7x (2 TCs/chip): 1 batch per grid step so the 'parallel' grid axis puts
    one batch on each TensorCore.  v5e/v6e (single TC): fold the whole batch
    into one grid step (no per-step pipeline overhead)."""
    try:
        kind = jax.devices()[0].device_kind.lower()
    except Exception:
        kind = ""
    if "v7" in kind and B > 1:
        return 1
    return B


def fused_prompt_forward_maps(text_emb, text_diff, gamma, v2_bf16, w_cat, aux_b,
                              u_t, batch_block):
    """Runs the fused kernel; returns (comb (B,K,2P), up (B*K,Ho*Wo))."""
    B, K, D = text_emb.shape
    _, P, Cv = v2_bf16.shape
    HoWo = u_t.shape[-1]
    bb = batch_block
    steps = B // bb

    g2 = gamma.reshape(1, D).astype(jnp.float32)
    b2 = aux_b.reshape(1, D).astype(jnp.float32)

    return pl.pallas_call(
        fused_prompt_kernel,
        grid=(steps,),
        in_specs=[
            pl.BlockSpec((bb, K, D), lambda b: (b, 0, 0)),     # text_emb
            pl.BlockSpec((bb, K, D), lambda b: (b, 0, 0)),     # text_diff
            pl.BlockSpec((1, D), lambda b: (0, 0)),            # gamma
            pl.BlockSpec((bb, P, Cv), lambda b: (b, 0, 0)),    # v2 (bf16)
            pl.BlockSpec((Cv, 2 * D), lambda b: (0, 0)),       # [aux_w | dec_w]
            pl.BlockSpec((1, D), lambda b: (0, 0)),            # aux bias
            pl.BlockSpec((P, HoWo), lambda b: (0, 0)),         # bilinear U^T
        ],
        out_specs=(
            pl.BlockSpec((bb, K, 2 * P), lambda b: (b, 0, 0)),
            pl.BlockSpec((bb * K, HoWo), lambda b: (b, 0)),
        ),
        out_shape=(
            jax.ShapeDtypeStruct((B, K, 2 * P), jnp.float32),
            jax.ShapeDtypeStruct((B * K, HoWo), jnp.float32),
        ),
        compiler_params=pltpu.CompilerParams(
            dimension_semantics=("parallel",)),
    )(text_emb, text_diff, g2, v2_bf16, w_cat, b2, u_t)


# ----------------------------------------------------------------------------
# Helpers (glue, deterministic parameters, stand-in sub-modules)
# ----------------------------------------------------------------------------

def bilinear_matrix(size_in, scale):
    """Interpolation matrix reproducing F.interpolate(..., mode='bilinear',
    scale_factor=scale, align_corners=False)."""
    size_out = size_in * scale
    i = jnp.arange(size_out, dtype=jnp.float32)
    src = (i + 0.5) / scale - 0.5
    src = jnp.maximum(src, 0.0)
    i0 = jnp.floor(src).astype(jnp.int32)
    i0 = jnp.minimum(i0, size_in - 1)
    i1 = jnp.minimum(i0 + 1, size_in - 1)
    w1 = src - i0.astype(jnp.float32)
    w0 = 1.0 - w1
    rows = jnp.arange(size_out)
    a = jnp.zeros((size_out, size_in), jnp.float32)
    a = a.at[rows, i0].add(w0)
    a = a.at[rows, i1].add(w1)
    return a


def bilinear_x4_operator_T(H, W):
    """U^T with U = kron(ah, aw): (H*W, 4H*4W). Entries (multiples of 1/64)
    are exactly representable in bf16, so the upsample stays exact."""
    ah = bilinear_matrix(H, 4)                                       # (4H, H)
    aw = bilinear_matrix(W, 4)                                       # (4W, W)
    u = jnp.einsum('oh,qw->oqhw', ah, aw).reshape(4 * H * 4 * W, H * W)
    return u.T.astype(jnp.bfloat16)                                  # (H*W, 16*H*W)


def vision_encoder_standin(pixel_values, patch_w):
    # TODO(synk): SwinTransformer has no definition in the snippet; deterministic
    # 4x4 patch-embed stand-in producing stage-3 tokens v[2] of shape (B, P, Cv).
    B = pixel_values.shape[0]
    p = pixel_values.reshape(B, 3, 8, 4, 8, 4).transpose(0, 2, 4, 1, 3, 5)
    p = p.reshape(B, 64, 3 * 4 * 4)
    return p @ patch_w                                               # (B, 64, Cv)


def text_encoder_standin(text_base, B):
    # TODO(synk): CLIPTextContextEncoder + learned contexts replaced by a fixed
    # deterministic embedding table.
    return jnp.broadcast_to(text_base, (B,) + text_base.shape[1:])


def context_decoder_standin(text_emb, visual_context, wv):
    # TODO(synk): ContextDecoder (multi-layer transformer) replaced by one
    # deterministic single-head cross-attention from text queries to visual keys.
    D = text_emb.shape[-1]
    vp = visual_context @ wv                                         # (B, P, D)
    logits = jnp.einsum('bkd,bpd->bkp', text_emb, vp) / jnp.sqrt(jnp.float32(D))
    attn = jax.nn.softmax(logits, axis=-1)
    return jnp.einsum('bkp,bpd->bkd', attn, vp)                      # (B, K, D)


# NOTE: the HierarchicalCrossA vision decoder stand-in is a deterministic linear
# projection of the stage-3 visual tokens (textual input unused in the stand-in);
# its weight is fused with aux_linear into w_cat and applied inside the kernel.
# TODO(synk): HierarchicalCrossA has no published definition in the snippet.


# ----------------------------------------------------------------------------
# Full forward (one fused Pallas kernel for the spelled-out hot path)
# ----------------------------------------------------------------------------

def prompt_aux_cross_a_forward(pixel_values, params):
    B = pixel_values.shape[0]

    # --- stand-in encoders (plain JAX glue) ---
    v2 = vision_encoder_standin(pixel_values, params['patch_w'])        # (B,P,Cv)
    text_emb = text_encoder_standin(params['text_base'], B)             # (B,K,D)
    text_diff = context_decoder_standin(text_emb, v2, params['ctx_wv']) # (B,K,D)

    _, P, _ = v2.shape
    _, K, D = text_emb.shape
    H = W = int(P ** 0.5)

    # v2 cast to bf16 in the wrapper (kernel cast it before the MXU anyway):
    # halves the v2 DMA with identical numerics.
    v2_bf16 = v2.astype(jnp.bfloat16)

    # fused projection weight [aux_w | dec_w] (bf16 MXU operand, f32 accumulate)
    w_cat = jnp.concatenate([params['aux_w'], params['dec_w']], axis=1)
    w_cat = w_cat.astype(jnp.bfloat16)                                  # (Cv, 2D)

    # precomputed bilinear-x4 operator (transposed kron), bf16-exact
    u_t = bilinear_x4_operator_T(H, W)                                  # (P, 16P)

    # --- everything the forward spells out, in ONE fused Pallas kernel ---
    comb, up = fused_prompt_forward_maps(
        text_emb, text_diff, params['gamma'], v2_bf16, w_cat, params['aux_b'],
        u_t, _batch_block_for_device(B))

    # comb lanes [0:P] = dec score map (already consumed by the in-kernel
    # upsample), lanes [P:2P] = aux/low score map.
    low_score_map = comb[:, :, P:].reshape(B, K, H, W)       # cheap slice+reshape
    score_map_up = up.reshape(B, K, 4 * H, 4 * W)            # free reshape

    return dict(outputs=score_map_up, low_score_map=low_score_map)


# ----------------------------------------------------------------------------
# Pure-JAX f32 reference of the same math (for a correctness check)
# ----------------------------------------------------------------------------

def reference_forward(pixel_values, params):
    B = pixel_values.shape[0]
    v2 = vision_encoder_standin(pixel_values, params['patch_w'])
    text_emb = text_encoder_standin(params['text_base'], B)
    text_diff = context_decoder_standin(text_emb, v2, params['ctx_wv'])
    t = text_emb + params['gamma'] * text_diff
    t_n = t / jnp.maximum(jnp.linalg.norm(t, axis=-1, keepdims=True), 1e-12)

    _, P, _ = v2.shape
    H = W = int(P ** 0.5)
    v_low = v2 @ params['aux_w'] + params['aux_b']
    v_low_n = v_low / jnp.maximum(jnp.linalg.norm(v_low, axis=-1, keepdims=True), 1e-12)
    low = jnp.einsum('bpc,bkc->bkp', v_low_n, t_n).reshape(B, -1, H, W)

    v_dec = v2 @ params['dec_w']
    v_dec_n = v_dec / jnp.maximum(jnp.linalg.norm(v_dec, axis=-1, keepdims=True), 1e-12)
    hi = jnp.einsum('bpc,bkc->bkp', v_dec_n, t_n).reshape(B, -1, H, W)

    ah = bilinear_matrix(H, 4)
    aw = bilinear_matrix(W, 4)
    hi_up = jnp.einsum('oh,bkhw,pw->bkop', ah, hi, aw)
    return dict(outputs=hi_up, low_score_map=low)


# ----------------------------------------------------------------------------
# Main
# ----------------------------------------------------------------------------

if __name__ == "__main__":
    # small shapes consistent with the module's forward
    B, Cv, D, K = 2, 128, 128, 8          # Cv ~ in_dims[-2], D ~ text_dim/dec_dim
    H_img = W_img = 32                    # pixel input; v[2] tokens: 8x8 = 64

    key = jax.random.PRNGKey(0)
    ks = jax.random.split(key, 8)
    pixel_values = jax.random.normal(ks[0], (B, 3, H_img, W_img), jnp.float32)

    params = dict(
        patch_w=0.05 * jax.random.normal(ks[1], (48, Cv), jnp.float32),
        text_base=jax.random.normal(ks[2], (1, K, D), jnp.float32),
        ctx_wv=0.05 * jax.random.normal(ks[3], (Cv, D), jnp.float32),
        gamma=jnp.ones((D,), jnp.float32) * 1e-4,          # nn.Parameter(ones*1e-4)
        aux_w=0.05 * jax.random.normal(ks[4], (Cv, D), jnp.float32),  # aux_linear W^T
        aux_b=0.01 * jax.random.normal(ks[5], (D,), jnp.float32),     # aux_linear bias
        dec_w=0.05 * jax.random.normal(ks[6], (Cv, D), jnp.float32),
    )

    fwd = jax.jit(prompt_aux_cross_a_forward)
    out = fwd(pixel_values, params)
    out = jax.tree_util.tree_map(jax.block_until_ready, out)

    ref = reference_forward(pixel_values, params)
    assert out['outputs'].shape == (B, K, 32, 32)
    assert out['low_score_map'].shape == (B, K, 8, 8)
    # bf16 MXU operands with f32 accumulation -> ~1e-3 abs error on cosine-scale values
    assert jnp.allclose(out['low_score_map'], ref['low_score_map'], atol=3e-3, rtol=3e-3)
    assert jnp.allclose(out['outputs'], ref['outputs'], atol=3e-3, rtol=3e-3)

    print("KERNEL_OK")
</pallas_src>

<mosaic_0001>
module attributes {stable_mosaic.version = 11 : i64} {
  func.func private @main(%arg0: i32) attributes {dimension_semantics = [#tpu.dimension_semantics<core_parallel>], iteration_bounds = array<i64: 2>, tpu.core_type = #tpu.core_type<sc_scalar_subcore>, window_params = []} {
    return
  }
}

module attributes {stable_mosaic.version = 11 : i64} {
  func.func private @main(%arg0: i32) attributes {dimension_semantics = [#tpu.dimension_semantics<core_parallel>], iteration_bounds = array<i64: 2>, tpu.core_type = #tpu.core_type<sc_scalar_subcore>, window_params = []} {
    return
  }
}

module attributes {stable_mosaic.version = 11 : i64} {
  func.func @fused_prompt_kernel(%arg0: i32, %arg1: memref<2x8x128xf32, #tpu.memory_space<vmem>>, %arg2: memref<2x8x128xf32, #tpu.memory_space<vmem>>, %arg3: memref<1x128xf32, #tpu.memory_space<vmem>>, %arg4: memref<2x64x128xbf16, #tpu.memory_space<vmem>>, %arg5: memref<128x256xbf16, #tpu.memory_space<vmem>>, %arg6: memref<1x128xf32, #tpu.memory_space<vmem>>, %arg7: memref<64x1024xbf16, #tpu.memory_space<vmem>>, %arg8: memref<2x8x128xf32, #tpu.memory_space<vmem>>, %arg9: memref<16x1024xf32, #tpu.memory_space<vmem>>) attributes {dimension_semantics = [#tpu.dimension_semantics<parallel>], iteration_bounds = array<i64: 1>, scalar_prefetch = 0 : i64, scratch_operands = 0 : i64, tpu.core_type = #tpu.core_type<tc>, window_params = [{transform_indices = @transform_0, window_bounds = array<i64: 2, 8, 128>}, {transform_indices = @transform_1, window_bounds = array<i64: 2, 8, 128>}, {pipeline_mode = #tpu.pipeline_mode<synchronous>, transform_indices = @transform_2, window_bounds = array<i64: 1, 128>}, {transform_indices = @transform_3, window_bounds = array<i64: 2, 64, 128>}, {pipeline_mode = #tpu.pipeline_mode<synchronous>, transform_indices = @transform_4, window_bounds = array<i64: 128, 256>}, {pipeline_mode = #tpu.pipeline_mode<synchronous>, transform_indices = @transform_5, window_bounds = array<i64: 1, 128>}, {pipeline_mode = #tpu.pipeline_mode<synchronous>, transform_indices = @transform_6, window_bounds = array<i64: 64, 1024>}, {transform_indices = @transform_7, window_bounds = array<i64: 2, 8, 128>}, {transform_indices = @transform_8, window_bounds = array<i64: 16, 1024>}]} {
    %c0 = arith.constant 0 : index
    %c0_0 = arith.constant 0 : index
    %0 = vector.load %arg3[%c0, %c0_0] : memref<1x128xf32, #tpu.memory_space<vmem>>, vector<1x128xf32>
    %1 = vector.shape_cast %0 : vector<1x128xf32> to vector<1x1x128xf32>
    %c0_1 = arith.constant 0 : index
    %c0_2 = arith.constant 0 : index
    %c0_3 = arith.constant 0 : index
    %2 = vector.load %arg1[%c0_1, %c0_2, %c0_3] : memref<2x8x128xf32, #tpu.memory_space<vmem>>, vector<2x8x128xf32>
    %c0_4 = arith.constant 0 : index
    %c0_5 = arith.constant 0 : index
    %c0_6 = arith.constant 0 : index
    %3 = vector.load %arg2[%c0_4, %c0_5, %c0_6] : memref<2x8x128xf32, #tpu.memory_space<vmem>>, vector<2x8x128xf32>
    %4 = vector.broadcast %1 : vector<1x1x128xf32> to vector<2x8x128xf32>
    %5 = arith.mulf %4, %3 : vector<2x8x128xf32>
    %6 = arith.addf %2, %5 : vector<2x8x128xf32>
    %7 = arith.mulf %6, %6 : vector<2x8x128xf32>
    %cst = arith.constant dense<0.000000e+00> : vector<2x8xf32>
    %8 = vector.multi_reduction <add>, %7, %cst [2] : vector<2x8x128xf32> to vector<2x8xf32>
    %9 = vector.shape_cast %8 : vector<2x8xf32> to vector<2x8x1xf32>
    %cst_7 = arith.constant 1.000000e-24 : f32
    %10 = vector.broadcast %cst_7 : f32 to vector<2x8x1xf32>
    %11 = arith.maximumf %9, %10 : vector<2x8x1xf32>
    %12 = math.rsqrt %11 : vector<2x8x1xf32>
    %13 = vector.broadcast %12 : vector<2x8x1xf32> to vector<2x8x128xf32>
    %14 = arith.mulf %6, %13 : vector<2x8x128xf32>
    %15 = arith.truncf %14 : vector<2x8x128xf32> to vector<2x8x128xbf16>
    %c0_8 = arith.constant 0 : index
    %c0_9 = arith.constant 0 : index
    %c0_10 = arith.constant 0 : index
    %16 = vector.load %arg4[%c0_8, %c0_9, %c0_10] : memref<2x64x128xbf16, #tpu.memory_space<vmem>>, vector<2x64x128xbf16>
    %17 = vector.shape_cast %16 : vector<2x64x128xbf16> to vector<128x128xbf16>
    %c0_11 = arith.constant 0 : index
    %c0_12 = arith.constant 0 : index
    %18 = vector.load %arg5[%c0_11, %c0_12] : memref<128x256xbf16, #tpu.memory_space<vmem>>, vector<128x256xbf16>
    %cst_13 = arith.constant dense<0.000000e+00> : vector<128x256xf32>
    %19 = tpu.matmul %17, %18, %cst_13 {dimension_numbers = #tpu.dot_dimension_numbers<[1], [0], [0], [1], [0, 0, 1, 1], [], []>} : vector<128x128xbf16>, vector<128x256xbf16>, vector<128x256xf32> -> vector<128x256xf32>
    %20 = vector.extract_strided_slice %19 {offsets = [0, 0], sizes = [128, 128], strides = [1, 1]} : vector<128x256xf32> to vector<128x128xf32>
    %c0_14 = arith.constant 0 : index
    %c0_15 = arith.constant 0 : index
    %21 = vector.load %arg6[%c0_14, %c0_15] : memref<1x128xf32, #tpu.memory_space<vmem>>, vector<1x128xf32>
    %22 = vector.broadcast %21 : vector<1x128xf32> to vector<128x128xf32>
    %23 = arith.addf %20, %22 : vector<128x128xf32>
    %24 = vector.extract_strided_slice %19 {offsets = [0, 128], sizes = [128, 128], strides = [1, 1]} : vector<128x256xf32> to vector<128x128xf32>
    %25 = arith.mulf %23, %23 : vector<128x128xf32>
    %cst_16 = arith.constant dense<0.000000e+00> : vector<128xf32>
    %26 = vector.multi_reduction <add>, %25, %cst_16 [1] : vector<128x128xf32> to vector<128xf32>
    %27 = vector.shape_cast %26 : vector<128xf32> to vector<128x1xf32>
    %cst_17 = arith.constant 1.000000e-24 : f32
    %28 = vector.broadcast %cst_17 : f32 to vector<128x1xf32>
    %29 = arith.maximumf %27, %28 : vector<128x1xf32>
    %30 = math.rsqrt %29 : vector<128x1xf32>
    %31 = vector.broadcast %30 : vector<128x1xf32> to vector<128x128xf32>
    %32 = arith.mulf %23, %31 : vector<128x128xf32>
    %33 = vector.shape_cast %32 : vector<128x128xf32> to vector<2x64x128xf32>
    %34 = arith.mulf %24, %24 : vector<128x128xf32>
    %cst_18 = arith.constant dense<0.000000e+00> : vector<128xf32>
    %35 = vector.multi_reduction <add>, %34, %cst_18 [1] : vector<128x128xf32> to vector<128xf32>
    %36 = vector.shape_cast %35 : vector<128xf32> to vector<128x1xf32>
    %cst_19 = arith.constant 1.000000e-24 : f32
    %37 = vector.broadcast %cst_19 : f32 to vector<128x1xf32>
    %38 = arith.maximumf %36, %37 : vector<128x1xf32>
    %39 = math.rsqrt %38 : vector<128x1xf32>
    %40 = vector.broadcast %39 : vector<128x1xf32> to vector<128x128xf32>
    %41 = arith.mulf %24, %40 : vector<128x128xf32>
    %42 = vector.shape_cast %41 : vector<128x128xf32> to vector<2x64x128xf32>
    %43 = tpu.concatenate %42, %33 in 1 : vector<2x64x128xf32>, vector<2x64x128xf32> -> vector<2x128x128xf32>
    %44 = arith.truncf %43 : vector<2x128x128xf32> to vector<2x128x128xbf16>
    %cst_20 = arith.constant dense<0.000000e+00> : vector<2x8x128xf32>
    %45 = tpu.matmul %15, %44, %cst_20 {dimension_numbers = #tpu.dot_dimension_numbers<[2], [2], [1], [1], [0, 0, 0, 1, 1, 1], [0], [0]>} : vector<2x8x128xbf16>, vector<2x128x128xbf16>, vector<2x8x128xf32> -> vector<2x8x128xf32>
    %c0_21 = arith.constant 0 : index
    %c0_22 = arith.constant 0 : index
    %c0_23 = arith.constant 0 : index
    %46 = vector.load %arg8[%c0_21, %c0_22, %c0_23] : memref<2x8x128xf32, #tpu.memory_space<vmem>>, vector<2x8x128xf32>
    tpu.vector_store %arg8[%c0_21, %c0_22, %c0_23], %45 {strides = array<i32>} : memref<2x8x128xf32, #tpu.memory_space<vmem>>, vector<2x8x128xf32>,
    %47 = vector.extract_strided_slice %45 {offsets = [0, 0, 0], sizes = [2, 8, 64], strides = [1, 1, 1]} : vector<2x8x128xf32> to vector<2x8x64xf32>
    %48 = vector.shape_cast %47 : vector<2x8x64xf32> to vector<16x64xf32>
    %49 = arith.truncf %48 : vector<16x64xf32> to vector<16x64xbf16>
    %c0_24 = arith.constant 0 : index
    %c0_25 = arith.constant 0 : index
    %50 = vector.load %arg7[%c0_24, %c0_25] : memref<64x1024xbf16, #tpu.memory_space<vmem>>, vector<64x1024xbf16>
    %cst_26 = arith.constant dense<0.000000e+00> : vector<16x1024xf32>
    %51 = tpu.matmul %49, %50, %cst_26 {dimension_numbers = #tpu.dot_dimension_numbers<[1], [0], [0], [1], [0, 0, 1, 1], [], []>} : vector<16x64xbf16>, vector<64x1024xbf16>, vector<16x1024xf32> -> vector<16x1024xf32>
    %c0_27 = arith.constant 0 : index
    %c0_28 = arith.constant 0 : index
    %52 = vector.load %arg9[%c0_27, %c0_28] : memref<16x1024xf32, #tpu.memory_space<vmem>>, vector<16x1024xf32>
    tpu.vector_store %arg9[%c0_27, %c0_28], %51 {strides = array<i32>} : memref<16x1024xf32, #tpu.memory_space<vmem>>, vector<16x1024xf32>,
    return
  }
  func.func @transform_0(%arg0: i32) -> (i32, i32, i32) {
    %c0_i32 = arith.constant 0 : i32
    %c0_i32_0 = arith.constant 0 : i32
    %c0_i32_1 = arith.constant 0 : i32
    return %arg0, %c0_i32, %c0_i32_0 : i32, i32, i32
  }
  func.func @transform_1(%arg0: i32) -> (i32, i32, i32) {
    %c0_i32 = arith.constant 0 : i32
    %c0_i32_0 = arith.constant 0 : i32
    %c0_i32_1 = arith.constant 0 : i32
    return %arg0, %c0_i32, %c0_i32_0 : i32, i32, i32
  }
  func.func @transform_2(%arg0: i32) -> (i32, i32) {
    %c0_i32 = arith.constant 0 : i32
    %c0_i32_0 = arith.constant 0 : i32
    %c0_i32_1 = arith.constant 0 : i32
    return %c0_i32, %c0_i32_0 : i32, i32
  }
  func.func @transform_3(%arg0: i32) -> (i32, i32, i32) {
    %c0_i32 = arith.constant 0 : i32
    %c0_i32_0 = arith.constant 0 : i32
    %c0_i32_1 = arith.constant 0 : i32
    return %arg0, %c0_i32, %c0_i32_0 : i32, i32, i32
  }
  func.func @transform_4(%arg0: i32) -> (i32, i32) {
    %c0_i32 = arith.constant 0 : i32
    %c0_i32_0 = arith.constant 0 : i32
    %c0_i32_1 = arith.constant 0 : i32
    return %c0_i32, %c0_i32_0 : i32, i32
  }
  func.func @transform_5(%arg0: i32) -> (i32, i32) {
    %c0_i32 = arith.constant 0 : i32
    %c0_i32_0 = arith.constant 0 : i32
    %c0_i32_1 = arith.constant 0 : i32
    return %c0_i32, %c0_i32_0 : i32, i32
  }
  func.func @transform_6(%arg0: i32) -> (i32, i32) {
    %c0_i32 = arith.constant 0 : i32
    %c0_i32_0 = arith.constant 0 : i32
    %c0_i32_1 = arith.constant 0 : i32
    return %c0_i32, %c0_i32_0 : i32, i32
  }
  func.func @transform_7(%arg0: i32) -> (i32, i32, i32) {
    %c0_i32 = arith.constant 0 : i32
    %c0_i32_0 = arith.constant 0 : i32
    %c0_i32_1 = arith.constant 0 : i32
    return %arg0, %c0_i32, %c0_i32_0 : i32, i32, i32
  }
  func.func @transform_8(%arg0: i32) -> (i32, i32) {
    %c0_i32 = arith.constant 0 : i32
    %c0_i32_0 = arith.constant 0 : i32
    return %arg0, %c0_i32 : i32, i32
  }
}

</mosaic_0001>

<bundles_post_ra>
// kernel: prompt_aux_cross_a_forward.1
= control target key start
LH: loop header
LB: loop body
LE: loop exit
PB: predicated region body
PF: predicated region fallthrough
CT: control target
= control target key end

     0   :  { %v1260_v1 = vmov 0   ;;  %v1261_v44 = vmov 0.0   ;;  %vm1262_vm0 = vmmov 0   ;;  %vm837_vm1 = vcmask 523264   ;;  %s1791_s4 = inlined_call_operand.vmem [shape: bf16[128,256], index: 4, kind: input, shape index: {}]   ;;  %s1792_s3 = inlined_call_operand.vmem [shape: bf16[2,64,128], index: 3, kind: input, shape index: {}]   ;;  %s1793_s5 = inlined_call_operand.vmem [shape: f32[1,128], index: 5, kind: input, shape index: {}]   ;;  %s1794_s1 = inlined_call_operand.vmem [shape: f32[2,8,128], index: 1, kind: input, shape index: {}]   ;;  %s1795_s2 = inlined_call_operand.vmem [shape: f32[1,128], index: 2, kind: input, shape index: {}]   ;;  %s1796_s0 = inlined_call_operand.vmem [shape: f32[2,8,128], index: 0, kind: input, shape index: {}]   ;;  %s1797_s6 = inlined_call_operand.vmem [shape: bf16[64,1024], index: 6, kind: input, shape index: {}]   ;;  %s1798_s7 = inlined_call_operand.vmem [shape: f32[2,8,128], index: 7, kind: output, shape index: {0}]   ;;  %s1799_s8 = inlined_call_operand.vmem [shape: f32[16,1024], index: 8, kind: output, shape index: {1}]  }
   0x1   :  { %v1160_v0 = vld [vmem:[%s1791_s4 + $0x4] ss:$8 sps:$4 sm:$0xff]   ;;  %250 = vmatprep.mubr.bf16.mxu0 %v1260_v1  ;;  %v1162_v2 = vld [vmem:[%s1791_s4] ss:$8 sps:$4 sm:$0xff]   ;;  %v1163_v3 = vld [vmem:[%s1791_s4 + $0x14] ss:$8 sps:$4 sm:$0xff]   ;;  %1117 = vmatprep.subr.bf16.mxu1 %v1261_v44 }
   0x2   :  { %218 = vmatprep.subr.bf16.mxu0 %v1160_v0  ;;  %v1165_v4 = vld [vmem:[%s1791_s4 + $0x10] ss:$8 sps:$4 sm:$0xff]   ;;  %v1166_v5 = vld [vmem:[%s1791_s4 + $0x24] ss:$8 sps:$4 sm:$0xff]   ;;  %v1168_v6 = vld [vmem:[%s1791_s4 + $0x20] ss:$8 sps:$4 sm:$0xff]   ;;  %1133 = vmatprep.mubr.msk.bf16.mxu1 %vm1262_vm0, %v1261_v44 }
   0x3   :  { %219 = vmatpush1.bf16.msra.mxu0 %v1162_v2  ;;  %v1169_v7 = vld [vmem:[%s1791_s4 + $0x34] ss:$8 sps:$4 sm:$0xff]   ;;  %v1171_v8 = vld [vmem:[%s1791_s4 + $0x30] ss:$8 sps:$4 sm:$0xff]   ;;  %v1172_v9 = vld [vmem:[%s1791_s4 + $0x44] ss:$8 sps:$4 sm:$0xff]  }
   0x4   :  { %220 = vmatprep.subr.bf16.mxu0 %v1163_v3  ;;  %v1174_v10 = vld [vmem:[%s1791_s4 + $0x40] ss:$8 sps:$4 sm:$0xff]   ;;  %v1175_v11 = vld [vmem:[%s1791_s4 + $0x54] ss:$8 sps:$4 sm:$0xff]   ;;  %v1177_v12 = vld [vmem:[%s1791_s4 + $0x50] ss:$8 sps:$4 sm:$0xff]  }
   0x5   :  { %v1178_v13 = vld [vmem:[%s1791_s4 + $0x64] ss:$8 sps:$4 sm:$0xff]   ;;  %v1180_v14 = vld [vmem:[%s1791_s4 + $0x60] ss:$8 sps:$4 sm:$0xff]   ;;  %v1181_v15 = vld [vmem:[%s1791_s4 + $0x74] ss:$8 sps:$4 sm:$0xff]  }
   0x6   :  { %v1183_v16 = vld [vmem:[%s1791_s4 + $0x70] ss:$8 sps:$4 sm:$0xff]   ;;  %v1184_v17 = vld [vmem:[%s1792_s3] sm:$0xff]   ;;  %v1185_v18 = vld [vmem:[%s1792_s3 + $0x8] sm:$0xff]  }
   0x7   :  { %221 = vmatpush1.bf16.msra.mxu0 %v1165_v4  ;;  %v1186_v19 = vld [vmem:[%s1792_s3 + $0x10] sm:$0xff]   ;;  %v1187_v20 = vld [vmem:[%s1792_s3 + $0x18] sm:$0xff]   ;;  %v1188_v21 = vld [vmem:[%s1792_s3 + $0x20] sm:$0xff]  }
   0x8   :  { %222 = vmatprep.subr.bf16.mxu0 %v1166_v5  ;;  %v1189_v22 = vld [vmem:[%s1792_s3 + $0x28] sm:$0xff]   ;;  %v1190_v23 = vld [vmem:[%s1792_s3 + $0x30] sm:$0xff]   ;;  %v1191_v24 = vld [vmem:[%s1792_s3 + $0x38] sm:$0xff]  }
   0x9   :  { %v1461_v4 = vld [vmem:[%s1793_s5] ss:$0 sm:$0xff] }
   0xb   :  { %223 = vmatpush1.bf16.msra.mxu0 %v1168_v6 }
   0xc   :  { %224 = vmatprep.subr.bf16.mxu0 %v1169_v7 }
   0xf   :  { %225 = vmatpush1.bf16.msra.mxu0 %v1171_v8 }
  0x10   :  { %226 = vmatprep.subr.bf16.mxu0 %v1172_v9 }
  0x13   :  { %227 = vmatpush1.bf16.msra.mxu0 %v1174_v10 }
  0x14   :  { %228 = vmatprep.subr.bf16.mxu0 %v1175_v11 }
  0x17   :  { %229 = vmatpush1.bf16.msra.mxu0 %v1177_v12 }
  0x18   :  { %230 = vmatprep.subr.bf16.mxu0 %v1178_v13 }
  0x1b   :  { %231 = vmatpush1.bf16.msra.mxu0 %v1180_v14 }
  0x1c   :  { %232 = vmatprep.subr.bf16.mxu0 %v1181_v15 }
  0x1f   :  { %233 = vmatpush1.bf16.msra.mxu0 %v1183_v16 }
  0x20   :  { %1137 = vmatprep.subr.bf16.mxu0 %v1261_v44 }
  0x22   :  { %251 = vmatmul.mubr.bf16.vlgmr.msra.gmra.mrb[0].mxu0 %v1184_v17 }
  0x23   :  { %260 = vmatprep.mubr.bf16.mxu0 %v1260_v1 }
  0x2a   :  { %261 = vmatmul.mubr.bf16.gmra.mrb[4].mxu0 %v1185_v18 }
  0x2b   :  { %270 = vmatprep.mubr.bf16.mxu0 %v1260_v1 }
  0x32   :  { %271 = vmatmul.mubr.bf16.gmra.mrb[8].mxu0 %v1186_v19 }
  0x33   :  { %280 = vmatprep.mubr.bf16.mxu0 %v1260_v1 }
  0x3a   :  { %281 = vmatmul.mubr.bf16.gmra.mrb[12].mxu0 %v1187_v20 }
  0x3b   :  { %290 = vmatprep.mubr.bf16.mxu0 %v1260_v1 }
  0x42   :  { %291 = vmatmul.mubr.bf16.gmra.mrb[16].mxu0 %v1188_v21 }
  0x43   :  { %300 = vmatprep.mubr.bf16.mxu0 %v1260_v1 }
  0x4a   :  { %301 = vmatmul.mubr.bf16.gmra.mrb[20].mxu0 %v1189_v22 }
  0x4b   :  { %310 = vmatprep.mubr.bf16.mxu0 %v1260_v1 }
  0x52   :  { %311 = vmatmul.mubr.bf16.gmra.mrb[24].mxu0 %v1190_v23 }
  0x53   :  { %320 = vmatprep.mubr.bf16.mxu0 %v1260_v1 }
  0x5a   :  { %321 = vmatmul.mubr.bf16.gmra.mrb[28].mxu0 %v1191_v24 }
  0x5b   :  { %1153 = vmatprep.mubr.msk.bf16.mxu0 %vm1262_vm0, %v1261_v44 }
  0xf5   :  { %v252_v25 = vpop.f32.mrb[0].mxu0 }
  0xf6   :  { %v1388_v26 = vpop.f32.mrb[1].mxu0  ;;  %v1466_v7 = vadd.f32 %v1461_v4, %v252_v25 }
  0xf7   :  { %v1390_v27 = vpop.f32.mrb[2].mxu0  ;;  %v450_v28 = vmul.f32 %v1388_v26, %v1388_v26 }
  0xf8   :  { %v1394_v29 = vpop.f32.mrb[3].mxu0  ;;  %v1476_v12 = vadd.f32 %v1461_v4, %v1390_v27  ;;  %v354_v14 = vmul.f32 %v1466_v7, %v1466_v7 }
  0xf9   :  { %466 = vadd.xlane.f32.xlu0 %v450_v28  ;;  %v451_v30 = vmul.f32 %v1394_v29, %v1394_v29 }
  0xfa   :  { %v355_v19 = vmul.f32 %v1476_v12, %v1476_v12 }
  0xfd   :  { %468 = vadd.xlane.f32.xlu0 %v451_v30  ;;  %v1398_v31 = vpop.f32.mrb[4].mxu0 }
  0xfe   :  { %v1400_v32 = vpop.f32.mrb[5].mxu0  ;;  %v1487_v16 = vadd.f32 %v1461_v4, %v1398_v31 }
  0xff   :  { %v1402_v33 = vpop.f32.mrb[6].mxu0  ;;  %v452_v34 = vmul.f32 %v1400_v32, %v1400_v32 }
 0x100   :  { %v1406_v35 = vpop.f32.mrb[7].mxu0  ;;  %v1498_v20 = vadd.f32 %v1461_v4, %v1402_v33  ;;  %v356_v22 = vmul.f32 %v1487_v16, %v1487_v16 }
 0x101   :  { %470 = vadd.xlane.f32.xlu0 %v452_v34  ;;  %v453_v54 = vmul.f32 %v1406_v35, %v1406_v35 }
 0x102   :  { %v357_v28 = vmul.f32 %v1498_v20, %v1498_v20 }
 0x105   :  { %v1408_v36 = vpop.f32.mrb[8].mxu0 }
 0x106   :  { %v1410_v37 = vpop.f32.mrb[9].mxu0  ;;  %v1509_v24 = vadd.f32 %v1461_v4, %v1408_v36  ;;  %v1037_v36 = vld [vmem:[%s1795_s2] ss:$0 sm:$0xff] }
 0x107   :  { %v1412_v38 = vpop.f32.mrb[10].mxu0  ;;  %v454_v57 = vmul.f32 %v1410_v37, %v1410_v37 }
 0x108   :  { %v1414_v39 = vpop.f32.mrb[11].mxu0  ;;  %v1520_v30 = vadd.f32 %v1461_v4, %v1412_v38  ;;  %v358_v33 = vmul.f32 %v1509_v24, %v1509_v24  ;;  %v32_v38 = vld [vmem:[%s1794_s1] sm:$0xff] }
 0x109   :  { %v455_v62 = vmul.f32 %v1414_v39, %v1414_v39 }
 0x10d   :  { %v1416_v40 = vpop.f32.mrb[12].mxu0 }
 0x10e   :  { %v1418_v41 = vpop.f32.mrb[13].mxu0 }
 0x10f   :  { %v1420_v42 = vpop.f32.mrb[14].mxu0  ;;  %v456_v2 = vmul.f32 %v1418_v41, %v1418_v41 }
 0x110   :  { %v1422_v43 = vpop.f32.mrb[15].mxu0 }
 0x111   :  { %v457_v9 = vmul.f32 %v1422_v43, %v1422_v43 }
 0x115   :  { %v292_v45 = vpop.f32.mrb[16].mxu0 }
 0x116   :  { %v1426_v46 = vpop.f32.mrb[17].mxu0  ;;  %v1479_v13 = vadd.f32 %v1461_v4, %v292_v45  ;;  %v1537_v45 = vadd.f32 %v1461_v4, %v1416_v40  ;;  %v33_v40 = vld [vmem:[%s1794_s1 + $0x8] sm:$0xff] }
 0x117   :  { %v296_v47 = vpop.f32.mrb[18].mxu0  ;;  %v458_v48 = vmul.f32 %v1426_v46, %v1426_v46 }
 0x118   :  { %v1430_v49 = vpop.f32.mrb[19].mxu0  ;;  %v1490_v17 = vadd.f32 %v1461_v4, %v296_v47  ;;  %v362_v18 = vmul.f32 %v1479_v13, %v1479_v13 }
 0x119   :  { %482 = vadd.xlane.f32.xlu1 %v458_v48  ;;  %v459_v50 = vmul.f32 %v1430_v49, %v1430_v49 }
 0x11a   :  { %v363_v23 = vmul.f32 %v1490_v17, %v1490_v17 }
 0x11d   :  { %484 = vadd.xlane.f32.xlu1 %v459_v50  ;;  %v302_v51 = vpop.f32.mrb[20].mxu0  ;;  %v359_v50 = vmul.f32 %v1520_v30, %v1520_v30 }
 0x11e   :  { %v1434_v52 = vpop.f32.mrb[21].mxu0  ;;  %v1501_v21 = vadd.f32 %v1461_v4, %v302_v51  ;;  %v40_v51 = vmul.f32 %v1037_v36, %v32_v38 }
 0x11f   :  { %v306_v53 = vpop.f32.mrb[22].mxu0  ;;  %v460_v55 = vmul.f32 %v1434_v52, %v1434_v52 }
 0x120   :  { %v1440_v56 = vpop.f32.mrb[23].mxu0  ;;  %v1512_v25 = vadd.f32 %v1461_v4, %v306_v53  ;;  %v364_v27 = vmul.f32 %v1501_v21, %v1501_v21  ;;  %v30_v53 = vld [vmem:[%s1796_s0] sm:$0xff] }
 0x121   :  { %472 = vadd.xlane.f32.xlu1 %v453_v54  ;;  %486 = vadd.xlane.f32.xlu0 %v460_v55  ;;  %v461_v58 = vmul.f32 %v1440_v56, %v1440_v56  ;;  %v1554_v54 = vadd.f32 %v1461_v4, %v1420_v42 }
 0x122   :  { %v365_v34 = vmul.f32 %v1512_v25, %v1512_v25 }
 0x125   :  { %474 = vadd.xlane.f32.xlu0 %v454_v57  ;;  %488 = vadd.xlane.f32.xlu1 %v461_v58  ;;  %v312_v59 = vpop.f32.mrb[24].mxu0  ;;  %v360_v57 = vmul.f32 %v1537_v45, %v1537_v45 }
 0x126   :  { %v1446_v60 = vpop.f32.mrb[25].mxu0  ;;  %v1523_v31 = vadd.f32 %v1461_v4, %v312_v59  ;;  %v1563_v59 = vadd.f32 %v40_v51, %v30_v53 }
 0x127   :  { %v316_v61 = vpop.f32.mrb[26].mxu0  ;;  %v462_v63 = vmul.f32 %v1446_v60, %v1446_v60 }
 0x128   :  { %v1452_v0 = vpop.f32.mrb[27].mxu0  ;;  %v1540_v47 = vadd.f32 %v1461_v4, %v316_v61  ;;  %v366_v48 = vmul.f32 %v1523_v31, %v1523_v31  ;;  %v41_v61 = vmul.f32 %v1037_v36, %v33_v40 }
 0x129   :  { %476 = vadd.xlane.f32.xlu1 %v455_v62  ;;  %490 = vadd.xlane.f32.xlu0 %v462_v63  ;;  %v463_v3 = vmul.f32 %v1452_v0, %v1452_v0  ;;  %v31_v62 = vld [vmem:[%s1796_s0 + $0x8] sm:$0xff] }
 0x12a   :  { %v367_v58 = vmul.f32 %v1540_v47, %v1540_v47 }
 0x12d   :  { %478 = vadd.xlane.f32.xlu0 %v456_v2  ;;  %492 = vadd.xlane.f32.xlu1 %v463_v3  ;;  %v322_v5 = vpop.f32.mrb[28].mxu0  ;;  %v361_v2 = vmul.f32 %v1554_v54, %v1554_v54  ;;  %v44_v3 = vmul.f32 %v1563_v59, %v1563_v59 }
 0x12e   :  { %v1463_v6 = vpop.f32.mrb[29].mxu0  ;;  %v1557_v55 = vadd.f32 %v1461_v4, %v322_v5  ;;  %v1577_v5 = vadd.f32 %v41_v61, %v31_v62 }
 0x12f   :  { %v326_v8 = vpop.f32.mrb[30].mxu0  ;;  %v464_v10 = vmul.f32 %v1463_v6, %v1463_v6 }
 0x130   :  { %v1472_v11 = vpop.f32.mrb[31].mxu0  ;;  %v1569_v42 = vadd.f32 %v1461_v4, %v326_v8  ;;  %v368_v63 = vmul.f32 %v1557_v55, %v1557_v55  ;;  %v45_v4 = vmul.f32 %v1577_v5, %v1577_v5 }
 0x131   :  { %480 = vadd.xlane.f32.xlu1 %v457_v9  ;;  %494 = vadd.xlane.f32.xlu0 %v464_v10  ;;  %v465_v15 = vmul.f32 %v1472_v11, %v1472_v11 }
 0x132   :  { %v369_v9 = vmul.f32 %v1569_v42, %v1569_v42 }
 0x135   :  { %370 = vadd.xlane.f32.xlu0 %v354_v14  ;;  %496 = vadd.xlane.f32.xlu1 %v465_v15 }
 0x139   :  { %386 = vadd.xlane.f32.xlu0 %v362_v18  ;;  %372 = vadd.xlane.f32.xlu1 %v355_v19 }
 0x13d   :  { %374 = vadd.xlane.f32.xlu0 %v356_v22  ;;  %388 = vadd.xlane.f32.xlu1 %v363_v23 }
 0x141   :  { %390 = vadd.xlane.f32.xlu0 %v364_v27  ;;  %376 = vadd.xlane.f32.xlu1 %v357_v28 }
 0x145   :  { %378 = vadd.xlane.f32.xlu0 %v358_v33  ;;  %392 = vadd.xlane.f32.xlu1 %v365_v34 }
 0x149   :  { %394 = vadd.xlane.f32.xlu0 %v366_v48  ;;  %380 = vadd.xlane.f32.xlu1 %v359_v50 }
 0x14d   :  { %382 = vadd.xlane.f32.xlu0 %v360_v57  ;;  %396 = vadd.xlane.f32.xlu1 %v367_v58 }
 0x151   :  { %398 = vadd.xlane.f32.xlu0 %v368_v63  ;;  %384 = vadd.xlane.f32.xlu1 %v361_v2 }
 0x155   :  { %400 = vadd.xlane.f32.xlu1 %v369_v9  ;;  %46 = vadd.xlane.f32.xlu0 %v44_v3 }
 0x159   :  { %48 = vadd.xlane.f32.xlu1 %v45_v4 }
 0x186   :  { %v467_v8 = vpop.xlane.xlu0 %466 }
 0x187   :  { %v498_v10 = vmax.f32 %v467_v8, 1e-24 }
 0x189   :  { %1192 = vrsqrt.f32 %v498_v10 }
 0x18a   :  { %v469_v14 = vpop.xlane.xlu0 %468 }
 0x18b   :  { %v499_v15 = vmax.f32 %v469_v14, 1e-24 }
 0x18d   :  { %1194 = vrsqrt.f32 %v499_v15 }
 0x18e   :  { %v471_v34 = vpop.xlane.xlu0 %470 }
 0x18f   :  { %v500_v38 = vmax.f32 %v471_v34, 1e-24 }
 0x193   :  { %v1193_v18 = vpop.eup %1192 }
 0x194   :  { %v530_v22 = vmul.f32 %v1193_v18, %v1388_v26 }
 0x197   :  { %v1195_v19 = vpop.eup %1194 }
 0x198   :  { %v531_v23 = vmul.f32 %v1195_v19, %v1394_v29 }
 0x19a   :  { %v546_v27 = vpack.c.bf16 %v531_v23, %v530_v22 }
 0x19c   :  { %1118 = vmatpush3.bf16.xpose.msra.mxu1 %v546_v27 }
 0x19d   :  { %1119 = vmatprep.subr.bf16.mxu1 %v1261_v44 }
 0x1a6   :  { %v483_v28 = vpop.xlane.xlu1 %482 }
 0x1a7   :  { %v506_v33 = vmax.f32 %v483_v28, 1e-24 }
 0x1a9   :  { %1196 = vrsqrt.f32 %v506_v33 }
 0x1aa   :  { %v485_v36 = vpop.xlane.xlu1 %484 }
 0x1ab   :  { %v507_v48 = vmax.f32 %v485_v36, 1e-24 }
 0x1ad   :  { %1198 = vrsqrt.f32 %v507_v48 }
 0x1ae   :  { %v473_v50 = vpop.xlane.xlu1 %472  ;;  %v487_v51 = vpop.xlane.xlu0 %486  ;;  %1200 = vrsqrt.f32 %v500_v38 }
 0x1af   :  { %v501_v53 = vmax.f32 %v473_v50, 1e-24  ;;  %v508_v40 = vmax.f32 %v487_v51, 1e-24 }
 0x1b1   :  { %1202 = vrsqrt.f32 %v501_v53 }
 0x1b2   :  { %v475_v26 = vpop.xlane.xlu0 %474  ;;  %v489_v29 = vpop.xlane.xlu1 %488  ;;  %1204 = vrsqrt.f32 %v508_v40 }
 0x1b3   :  { %v502_v57 = vmax.f32 %v475_v26, 1e-24  ;;  %v509_v58 = vmax.f32 %v489_v29, 1e-24  ;;  %v1197_v61 = vpop.eup %1196 }
 0x1b4   :  { %v538_v4 = vmul.f32 %v1197_v61, %v1426_v46 }
 0x1b5   :  { %1206 = vrsqrt.f32 %v509_v58 }
 0x1b6   :  { %v477_v62 = vpop.xlane.xlu1 %476  ;;  %v491_v63 = vpop.xlane.xlu0 %490  ;;  %1208 = vrsqrt.f32 %v502_v57 }
 0x1b7   :  { %v1199_v2 = vpop.eup %1198  ;;  %v503_v3 = vmax.f32 %v477_v62, 1e-24  ;;  %v510_v9 = vmax.f32 %v491_v63, 1e-24 }
 0x1b8   :  { %v539_v8 = vmul.f32 %v1199_v2, %v1430_v49  ;;  %v1201_v10 = vpop.eup %1200 }
 0x1b9   :  { %1210 = vrsqrt.f32 %v503_v3  ;;  %v532_v27 = vmul.f32 %v1201_v10, %v1400_v32 }
 0x1ba   :  { %v479_v14 = vpop.xlane.xlu0 %478  ;;  %v493_v15 = vpop.xlane.xlu1 %492  ;;  %v554_v18 = vpack.c.bf16 %v539_v8, %v538_v4  ;;  %1212 = vrsqrt.f32 %v510_v9 }
 0x1bb   :  { %v1203_v19 = vpop.eup %1202  ;;  %v504_v22 = vmax.f32 %v479_v14, 1e-24  ;;  %v511_v23 = vmax.f32 %v493_v15, 1e-24 }
 0x1bc   :  { %1138 = vmatpush3.bf16.xpose.msra.mxu0 %v554_v18  ;;  %v533_v28 = vmul.f32 %v1203_v19, %v1406_v35  ;;  %v1205_v33 = vpop.eup %1204 }
 0x1bd   :  { %1139 = vmatprep.subr.bf16.mxu0 %v1261_v44  ;;  %1214 = vrsqrt.f32 %v511_v23  ;;  %v540_v51 = vmul.f32 %v1205_v33, %v1434_v52 }
 0x1be   :  { %v481_v46 = vpop.xlane.xlu1 %480  ;;  %v495_v49 = vpop.xlane.xlu0 %494  ;;  %v547_v34 = vpack.c.bf16 %v533_v28, %v532_v27  ;;  %1216 = vrsqrt.f32 %v504_v22 }
 0x1bf   :  { %v505_v36 = vmax.f32 %v481_v46, 1e-24  ;;  %v1207_v38 = vpop.eup %1206  ;;  %v512_v48 = vmax.f32 %v495_v49, 1e-24 }
 0x1c0   :  { %1120 = vmatpush3.bf16.xpose.msra.mxu1 %v547_v34  ;;  %v1209_v50 = vpop.eup %1208  ;;  %v541_v32 = vmul.f32 %v1207_v38, %v1440_v56 }
 0x1c1   :  { %1218 = vrsqrt.f32 %v505_v36  ;;  %1121 = vmatprep.subr.bf16.mxu1 %v1261_v44  ;;  %v534_v58 = vmul.f32 %v1209_v50, %v1410_v37 }
 0x1c2   :  { %v371_v35 = vpop.xlane.xlu0 %370  ;;  %v497_v53 = vpop.xlane.xlu1 %496  ;;  %v555_v29 = vpack.c.bf16 %v541_v32, %v540_v51  ;;  %1220 = vrsqrt.f32 %v512_v48 }
 0x1c3   :  { %v1211_v40 = vpop.eup %1210  ;;  %v513_v26 = vmax.f32 %v497_v53, 1e-24  ;;  %v402_v57 = vmax.f32 %v371_v35, 1e-24 }
 0x1c4   :  { %v535_v61 = vmul.f32 %v1211_v40, %v1414_v39  ;;  %1140 = vmatpush3.bf16.xpose.msra.mxu0 %v555_v29  ;;  %v1213_v62 = vpop.eup %1212 }
 0x1c5   :  { %1222 = vrsqrt.f32 %v513_v26  ;;  %1141 = vmatprep.subr.bf16.mxu0 %v1261_v44  ;;  %v542_v8 = vmul.f32 %v1213_v62, %v1446_v60 }
 0x1c6   :  { %v387_v63 = vpop.xlane.xlu0 %386  ;;  %v373_v52 = vpop.xlane.xlu1 %372  ;;  %v548_v2 = vpack.c.bf16 %v535_v61, %v534_v58  ;;  %1224 = vrsqrt.f32 %v402_v57 }
 0x1c7   :  { %v403_v56 = vmax.f32 %v373_v52, 1e-24  ;;  %v1215_v3 = vpop.eup %1214  ;;  %v410_v9 = vmax.f32 %v387_v63, 1e-24 }
 0x1c8   :  { %1122 = vmatpush3.bf16.xpose.msra.mxu1 %v548_v2  ;;  %v1217_v4 = vpop.eup %1216  ;;  %v543_v37 = vmul.f32 %v1215_v3, %v1452_v0 }
 0x1c9   :  { %1123 = vmatprep.subr.bf16.mxu1 %v1261_v44  ;;  %1226 = vrsqrt.f32 %v403_v56  ;;  %v536_v22 = vmul.f32 %v1217_v4, %v1418_v41 }
 0x1ca   :  { %v375_v39 = vpop.xlane.xlu0 %374  ;;  %v389_v10 = vpop.xlane.xlu1 %388  ;;  %v556_v18 = vpack.c.bf16 %v543_v37, %v542_v8  ;;  %1228 = vrsqrt.f32 %v410_v9 }
 0x1cb   :  { %v1219_v14 = vpop.eup %1218  ;;  %v411_v15 = vmax.f32 %v389_v10, 1e-24  ;;  %v404_v19 = vmax.f32 %v375_v39, 1e-24 }
 0x1cc   :  { %v537_v23 = vmul.f32 %v1219_v14, %v1422_v43  ;;  %1142 = vmatpush3.bf16.xpose.msra.mxu0 %v556_v18  ;;  %v1221_v27 = vpop.eup %1220 }
 0x1cd   :  { %1230 = vrsqrt.f32 %v411_v15  ;;  %1143 = vmatprep.subr.bf16.mxu0 %v1261_v44  ;;  %v544_v34 = vmul.f32 %v1221_v27, %v1463_v6 }
 0x1ce   :  { %v391_v60 = vpop.xlane.xlu0 %390  ;;  %v377_v28 = vpop.xlane.xlu1 %376  ;;  %v549_v0 = vpack.c.bf16 %v537_v23, %v536_v22  ;;  %1232 = vrsqrt.f32 %v404_v19 }
 0x1cf   :  { %v405_v33 = vmax.f32 %v377_v28, 1e-24  ;;  %v1223_v46 = vpop.eup %1222  ;;  %v412_v49 = vmax.f32 %v391_v60, 1e-24 }
 0x1d0   :  { %1124 = vmatpush3.bf16.xpose.msra.mxu1 %v549_v0  ;;  %v545_v36 = vmul.f32 %v1223_v46, %v1472_v11  ;;  %v1225_v41 = vpop.eup %1224 }
 0x1d1   :  { %1125 = vmatprep.subr.bf16.mxu1 %v1261_v44  ;;  %1234 = vrsqrt.f32 %v405_v33  ;;  %v434_v35 = vmul.f32 %v1225_v41, %v1466_v7 }
 0x1d2   :  { %v379_v43 = vpop.xlane.xlu0 %378  ;;  %v393_v38 = vpop.xlane.xlu1 %392  ;;  %v557_v50 = vpack.c.bf16 %v545_v36, %v544_v34  ;;  %1236 = vrsqrt.f32 %v412_v49 }
 0x1d3   :  { %v413_v48 = vmax.f32 %v393_v38, 1e-24  ;;  %v1227_v51 = vpop.eup %1226  ;;  %v406_v32 = vmax.f32 %v379_v43, 1e-24  ;;  %v649_v43 = vld [vmem:[%s1797_s6 + $0x20] sm:$0xff] }
 0x1d4   :  { %1144 = vmatpush3.bf16.xpose.msra.mxu0 %v557_v50  ;;  %v435_v53 = vmul.f32 %v1227_v51, %v1476_v12  ;;  %v1229_v40 = vpop.eup %1228 }
 0x1d5   :  { %1238 = vrsqrt.f32 %v413_v48  ;;  %1145 = vmatprep.subr.bf16.mxu0 %v1261_v44  ;;  %v442_v61 = vmul.f32 %v1229_v40, %v1479_v13 }
 0x1d6   :  { %v395_v6 = vpop.xlane.xlu0 %394  ;;  %v381_v11 = vpop.xlane.xlu1 %380  ;;  %v550_v29 = vpack.c.bf16 %v435_v53, %v434_v35  ;;  %1240 = vrsqrt.f32 %v406_v32  ;;  %v647_v35 = vld [vmem:[%s1797_s6 + $0x10] sm:$0xff] }
 0x1d7   :  { %v407_v26 = vmax.f32 %v381_v11, 1e-24  ;;  %v1231_v57 = vpop.eup %1230  ;;  %v414_v58 = vmax.f32 %v395_v6, 1e-24  ;;  %v651_v53 = vld [vmem:[%s1797_s6 + $0x30] sm:$0xff] }
 0x1d8   :  { %1126 = vmatpush3.bf16.xpose.msra.mxu1 %v550_v29  ;;  %v443_v62 = vmul.f32 %v1231_v57, %v1490_v17  ;;  %v1233_v63 = vpop.eup %1232  ;;  %v1068_v11 = vcombine.high %v647_v35, %v651_v53  ;;  %v653_v29 = vld [vmem:[%s1797_s6 + $0x40] sm:$0xff] }
 0x1d9   :  { %1242 = vrsqrt.f32 %v407_v26  ;;  %1127 = vmatprep.subr.bf16.mxu1 %v1261_v44  ;;  %v436_v9 = vmul.f32 %v1233_v63, %v1487_v16  ;;  %v657_v57 = vld [vmem:[%s1797_s6 + $0x60] sm:$0xff] }
 0x1da   :  { %v383_v7 = vpop.xlane.xlu0 %382  ;;  %v397_v12 = vpop.xlane.xlu1 %396  ;;  %v558_v2 = vpack.c.bf16 %v443_v62, %v442_v61  ;;  %1244 = vrsqrt.f32 %v414_v58  ;;  %v1072_v61 = vcombine.high %v653_v29, %v657_v57  ;;  %v659_v62 = vld [vmem:[%s1797_s6 + $0x70] sm:$0xff]  ;;  %v661_v63 = vld [vmem:[%s1797_s6 + $0x80] sm:$0xff] }
 0x1db   :  { %v415_v52 = vmax.f32 %v397_v12, 1e-24  ;;  %v1235_v56 = vpop.eup %1234  ;;  %v408_v3 = vmax.f32 %v383_v7, 1e-24  ;;  %v1067_v12 = vcombine.low %v647_v35, %v651_v53  ;;  %v652_v35 = vld [vmem:[%s1797_s6 + $0x38] sm:$0xff] }
 0x1dc   :  { %1146 = vmatpush3.bf16.xpose.msra.mxu0 %v558_v2  ;;  %v437_v4 = vmul.f32 %v1235_v56, %v1498_v20  ;;  %v1237_v8 = vpop.eup %1236 }
 0x1dd   :  { %1246 = vrsqrt.f32 %v415_v52  ;;  %1147 = vmatprep.subr.bf16.mxu0 %v1261_v44  ;;  %v444_v15 = vmul.f32 %v1237_v8, %v1501_v21  ;;  %v1071_v52 = vcombine.low %v653_v29, %v657_v57 }
 0x1de   :  { %v399_v13 = vpop.xlane.xlu0 %398  ;;  %v385_v17 = vpop.xlane.xlu1 %384  ;;  %v551_v10 = vpack.c.bf16 %v437_v4, %v436_v9  ;;  %1248 = vrsqrt.f32 %v408_v3  ;;  %v663_v3 = vld [vmem:[%s1797_s6 + $0x90] sm:$0xff] }
 0x1df   :  { %v416_v37 = vmax.f32 %v399_v13, 1e-24  ;;  %v409_v39 = vmax.f32 %v385_v17, 1e-24  ;;  %v1239_v14 = vpop.eup %1238  ;;  %v667_v9 = vld [vmem:[%s1797_s6 + $0xb0] sm:$0xff] }
 0x1e0   :  { %1128 = vmatpush3.bf16.xpose.msra.mxu1 %v551_v10  ;;  %v445_v18 = vmul.f32 %v1239_v14, %v1512_v25  ;;  %v1241_v19 = vpop.eup %1240  ;;  %v1084_v13 = vcombine.high %v663_v3, %v667_v9  ;;  %v1083_v17 = vcombine.low %v663_v3, %v667_v9  ;;  %v671_v14 = vld [vmem:[%s1797_s6 + $0xd0] sm:$0xff] }
 0x1e1   :  { %1250 = vrsqrt.f32 %v409_v39  ;;  %1129 = vmatprep.subr.bf16.mxu1 %v1261_v44  ;;  %v438_v28 = vmul.f32 %v1241_v19, %v1509_v24  ;;  %v673_v39 = vld [vmem:[%s1797_s6 + $0xe0] sm:$0xff] }
 0x1e2   :  { %v401_v16 = vpop.xlane.xlu1 %400  ;;  %v47_v20 = vpop.xlane.xlu0 %46  ;;  %1252 = vrsqrt.f32 %v416_v37  ;;  %v559_v23 = vpack.c.bf16 %v445_v18, %v444_v15  ;;  %v669_v37 = vld [vmem:[%s1797_s6 + $0xc0] sm:$0xff]  ;;  %v675_v15 = vld [vmem:[%s1797_s6 + $0xf0] sm:$0xff] }
 0x1e3   :  { %v417_v22 = vmax.f32 %v401_v16, 1e-24  ;;  %v50_v27 = vmax.f32 %v47_v20, 1e-24  ;;  %v1243_v60 = vpop.eup %1242  ;;  %v1088_v10 = vcombine.high %v669_v37, %v673_v39  ;;  %v1087_v18 = vcombine.low %v669_v37, %v673_v39  ;;  %v646_v20 = vld [vmem:[%s1797_s6 + $0x8] sm:$0xff] }
 0x1e4   :  { %1148 = vmatpush3.bf16.xpose.msra.mxu0 %v559_v23  ;;  %v439_v0 = vmul.f32 %v1243_v60, %v1520_v30  ;;  %v1245_v21 = vpop.eup %1244  ;;  %v645_v30 = vld [vmem:[%s1797_s6] sm:$0xff]  ;;  %v1091_v19 = vcombine.low %v671_v14, %v675_v15  ;;  %v1092_v16 = vcombine.high %v671_v14, %v675_v15 }
 0x1e5   :  { %1254 = vrsqrt.f32 %v417_v22  ;;  %1149 = vmatprep.subr.bf16.mxu0 %v1261_v44  ;;  %v446_v34 = vmul.f32 %v1245_v21, %v1523_v31  ;;  %v650_v22 = vld [vmem:[%s1797_s6 + $0x28] sm:$0xff] }
 0x1e6   :  { %1256 = vrsqrt.f32 %v50_v27  ;;  %v49_v25 = vpop.xlane.xlu1 %48  ;;  %v552_v33 = vpack.c.bf16 %v439_v0, %v438_v28  ;;  %v1066_v23 = vcombine.high %v646_v20, %v650_v22  ;;  %v1065_v27 = vcombine.low %v646_v20, %v650_v22  ;;  %v654_v21 = vld [vmem:[%s1797_s6 + $0x48] sm:$0xff] }
 0x1e7   :  { %v51_v46 = vmax.f32 %v49_v25, 1e-24  ;;  %v1247_v49 = vpop.eup %1246  ;;  %v658_v25 = vld [vmem:[%s1797_s6 + $0x68] sm:$0xff] }
 0x1e8   :  { %1130 = vmatpush3.bf16.xpose.msra.mxu1 %v552_v33  ;;  %v447_v36 = vmul.f32 %v1247_v49, %v1540_v47  ;;  %v1249_v41 = vpop.eup %1248  ;;  %v1064_v47 = vcombine.high %v645_v30, %v649_v43 }
 0x1e9   :  { %1258 = vrsqrt.f32 %v51_v46  ;;  %1131 = vmatprep.subr.bf16.mxu1 %v1261_v44  ;;  %v440_v50 = vmul.f32 %v1249_v41, %v1537_v45 }
 0x1ea   :  { %v560_v24 = vpack.c.bf16 %v447_v36, %v446_v34  ;;  %v1074_v36 = vcombine.high %v654_v21, %v658_v25 }
 0x1eb   :  { %v1251_v38 = vpop.eup %1250 }
 0x1ec   :  { %v1253_v48 = vpop.eup %1252  ;;  %1150 = vmatpush3.bf16.xpose.msra.mxu0 %v560_v24  ;;  %v441_v31 = vmul.f32 %v1251_v38, %v1554_v54  ;;  %v662_v24 = vld [vmem:[%s1797_s6 + $0x88] sm:$0xff]  ;;  %v1073_v38 = vcombine.low %v654_v21, %v658_v25 }
 0x1ed   :  { %1151 = vmatprep.subr.bf16.mxu0 %v1261_v44  ;;  %v448_v6 = vmul.f32 %v1253_v48, %v1557_v55 }
 0x1ee   :  { %v553_v32 = vpack.c.bf16 %v441_v31, %v440_v50  ;;  %v670_v50 = vld [vmem:[%s1797_s6 + $0xc8] sm:$0xff] }
 0x1ef   :  { %v1255_v51 = vpop.eup %1254  ;;  %v674_v31 = vld [vmem:[%s1797_s6 + $0xe8] sm:$0xff] }
 0x1f0   :  { %v1257_v40 = vpop.eup %1256  ;;  %v449_v45 = vmul.f32 %v1255_v51, %v1569_v42  ;;  %1132 = vmatpush3.bf16.xpose.msra.mxu1 %v553_v32  ;;  %v1063_v42 = vcombine.low %v645_v30, %v649_v43  ;;  %v666_v30 = vld [vmem:[%s1797_s6 + $0xa8] sm:$0xff]  ;;  %v1090_v51 = vcombine.high %v670_v50, %v674_v31  ;;  %v648_v32 = vld [vmem:[%s1797_s6 + $0x18] sm:$0xff]  ;;  %v1089_v53 = vcombine.low %v670_v50, %v674_v31 }
 0x1f1   :  { %v54_v54 = vmul.f32 %v1257_v40, %v1563_v59  ;;  %841 = vmatprep.subr.bf16.mxu1 %v1064_v47  ;;  %v655_v59 = vld [vmem:[%s1797_s6 + $0x50] sm:$0xff]  ;;  %v1082_v48 = vcombine.high %v662_v24, %v666_v30  ;;  %v1081_v47 = vcombine.low %v662_v24, %v666_v30  ;;  %v1070_v40 = vcombine.high %v648_v32, %v652_v35 }
 0x1f2   :  { %v561_v44 = vpack.c.bf16 %v449_v45, %v448_v6  ;;  %v1076_v2 = vcombine.high %v655_v59, %v659_v62  ;;  %v1075_v4 = vcombine.low %v655_v59, %v659_v62  ;;  %v656_v6 = vld [vmem:[%s1797_s6 + $0x58] sm:$0xff] }
 0x1f3   :  { %v1259_v26 = vpop.eup %1258  ;;  %v56_v55 = vpack.c.bf16 %v54_v54, %v54_v54  ;;  %v660_v45 = vld [vmem:[%s1797_s6 + $0x78] sm:$0xff]  ;;  %v1069_v54 = vcombine.low %v648_v32, %v652_v35 }
 0x1f4   :  { %v55_v58 = vmul.f32 %v1259_v26, %v1577_v5  ;;  %1152 = vmatpush3.bf16.xpose.msra.mxu0 %v561_v44  ;;  %v665_v5 = vld [vmem:[%s1797_s6 + $0xa0] sm:$0xff]  ;;  %v1078_v44 = vcombine.high %v656_v6, %v660_v45  ;;  %v668_v26 = vld [vmem:[%s1797_s6 + $0xb8] sm:$0xff]  ;;  %v1077_v29 = vcombine.low %v656_v6, %v660_v45 }
 0x1f5   :  { %927 = vmatprep.subr.bf16.mxu0 %v1068_v11  ;;  %v1080_v56 = vcombine.high %v661_v63, %v665_v5  ;;  %v1079_v8 = vcombine.low %v661_v63, %v665_v5  ;;  %v664_v11 = vld [vmem:[%s1797_s6 + $0x98] sm:$0xff] }
 0x1f6   :  { %v57_v7 = vpack.c.bf16 %v55_v58, %v55_v58  ;;  %v1086_v57 = vcombine.high %v664_v11, %v668_v26  ;;  %v672_v58 = vld [vmem:[%s1797_s6 + $0xd8] sm:$0xff] }
 0x1f7   :  { %1134 = vmatmul.mubr.bf16.vlgmr.msra.gmra.mrb[0].mxu1 %v56_v55  ;;  %v676_v55 = vld [vmem:[%s1797_s6 + $0xf8] sm:$0xff] }
 0x1f8   :  { %842 = vmatpush1.bf16.msra.mxu1 %v1063_v42  ;;  %873 = vmatprep.mubr.bf16.mxu1 %v1260_v1  ;;  %v1085_v42 = vcombine.low %v664_v11, %v668_v26  ;;  %v1093_v59 = vcombine.low %v672_v58, %v676_v55 }
 0x1f9   :  { %843 = vmatprep.subr.bf16.mxu1 %v1072_v61  ;;  %v1094_v61 = vcombine.high %v672_v58, %v676_v55 }
 0x1fb   :  { %1154 = vmatmul.mubr.bf16.vlgmr.msra.gmra.mrb[32].mxu0 %v57_v7 }
 0x1fc   :  { %928 = vmatpush1.bf16.msra.mxu0 %v1067_v12  ;;  %844 = vmatpush1.bf16.msra.mxu1 %v1071_v52 }
 0x1fd   :  { %929 = vmatprep.subr.bf16.mxu0 %v1076_v2  ;;  %845 = vmatprep.subr.bf16.mxu1 %v1080_v56 }
 0x1fe   :  { %959 = vmatprep.mubr.bf16.mxu0 %v1260_v1 }
 0x200   :  { %930 = vmatpush1.bf16.msra.mxu0 %v1075_v4  ;;  %846 = vmatpush1.bf16.msra.mxu1 %v1079_v8 }
 0x201   :  { %931 = vmatprep.subr.bf16.mxu0 %v1084_v13  ;;  %847 = vmatprep.subr.bf16.mxu1 %v1088_v10 }
 0x204   :  { %932 = vmatpush1.bf16.msra.mxu0 %v1083_v17  ;;  %848 = vmatpush1.bf16.msra.mxu1 %v1087_v18 }
 0x205   :  { %933 = vmatprep.subr.bf16.mxu0 %v1092_v16  ;;  %884 = vmatprep.subr.bf16.mxu1 %v1066_v23 }
 0x208   :  { %934 = vmatpush1.bf16.msra.mxu0 %v1091_v19 }
 0x2ca   :  { %v596_v60 = vpop.f32.mrb[0].mxu1 }
 0x2cb   :  { %642 = vst [vmem:[%s1798_s7] sm:$0xff] %v596_v60  ;;  %v1135_v28 = vpop.f32.mrb[1].mxu1 }
 0x2cc   :  { %v599_v0 = vpop.f32.mrb[2].mxu1 }
 0x2cd   :  { %v1136_v33 = vpop.f32.mrb[3].mxu1 }
 0x2ce   :  { %v636_v46 = vpop.f32.mrb[32].mxu0 }
 0x2cf   :  { %643 = vst [vmem:[%s1798_s7 + $0x8] sm:$0xff] %v636_v46  ;;  %v644_v49 = vpack.c.bf16 %v636_v46, %v596_v60  ;;  %v1155_v34 = vpop.f32.mrb[33].mxu0 }
 0x2d0   :  { %v639_v41 = vpop.f32.mrb[34].mxu0 }
 0x2d1   :  { %v1156_v43 = vpop.f32.mrb[35].mxu0  ;;  %1095 = vmatmul.mubr.msk.bf16.vlgmr.msra.gmra.mrb[4].mxu1 %vm837_vm1, %v644_v49  ;;  %1097 = vmatmul.mubr.msk.bf16.vlgmr.msra.gmra.mrb[36].mxu0 %vm837_vm1, %v644_v49 }
 0x2d2   :  { %885 = vmatpush1.bf16.msra.mxu1 %v1065_v27  ;;  %916 = vmatprep.mubr.bf16.mxu1 %v1260_v1 }
 0x2d3   :  { %886 = vmatprep.subr.bf16.mxu1 %v1074_v36 }
 0x2d6   :  { %887 = vmatpush1.bf16.msra.mxu1 %v1073_v38 }
 0x2d7   :  { %888 = vmatprep.subr.bf16.mxu1 %v1082_v48 }
 0x2da   :  { %889 = vmatpush1.bf16.msra.mxu1 %v1081_v47 }
 0x2db   :  { %890 = vmatprep.subr.bf16.mxu1 %v1090_v51 }
 0x2de   :  { %891 = vmatpush1.bf16.msra.mxu1 %v1089_v53 }
 0x2df   :  { %970 = vmatprep.subr.bf16.mxu1 %v1070_v40 }
 0x2e1   :  { %1096 = vmatmul.mubr.msk.bf16.vlgmr.msra.gmra.mrb[8].mxu1 %vm837_vm1, %v644_v49 }
 0x2e2   :  { %971 = vmatpush1.bf16.msra.mxu1 %v1069_v54  ;;  %1002 = vmatprep.mubr.bf16.mxu1 %v1260_v1 }
 0x2e3   :  { %972 = vmatprep.subr.bf16.mxu1 %v1078_v44 }
 0x2e6   :  { %973 = vmatpush1.bf16.msra.mxu1 %v1077_v29 }
 0x2e7   :  { %974 = vmatprep.subr.bf16.mxu1 %v1086_v57 }
 0x2ea   :  { %975 = vmatpush1.bf16.msra.mxu1 %v1085_v42 }
 0x2eb   :  { %976 = vmatprep.subr.bf16.mxu1 %v1094_v61 }
 0x2ee   :  { %977 = vmatpush1.bf16.msra.mxu1 %v1093_v59 }
 0x2f1   :  { %1098 = vmatmul.mubr.msk.bf16.vlgmr.msra.gmra.mrb[12].mxu1 %vm837_vm1, %v644_v49 }
 0x3a4   :  { %v875_v1 = vpop.f32.mrb[4].mxu1  ;;  %v961_v62 = vpop.f32.mrb[36].mxu0 }
 0x3a5   :  { %1013 = vst [vmem:[%s1799_s8] sm:$0xff] %v875_v1  ;;  %1017 = vst [vmem:[%s1799_s8 + $0x20] sm:$0xff] %v961_v62  ;;  %v877_v63 = vpop.f32.mrb[5].mxu1  ;;  %v963_v5 = vpop.f32.mrb[37].mxu0 }
 0x3a6   :  { %1014 = vst [vmem:[%s1799_s8 + $0x8] sm:$0xff] %v877_v63  ;;  %1018 = vst [vmem:[%s1799_s8 + $0x28] sm:$0xff] %v963_v5  ;;  %v879_v7 = vpop.f32.mrb[6].mxu1  ;;  %v965_v12 = vpop.f32.mrb[38].mxu0 }
 0x3a7   :  { %1021 = vst [vmem:[%s1799_s8 + $0x40] sm:$0xff] %v879_v7  ;;  %1025 = vst [vmem:[%s1799_s8 + $0x60] sm:$0xff] %v965_v12  ;;  %v881_v52 = vpop.f32.mrb[7].mxu1  ;;  %v967_v2 = vpop.f32.mrb[39].mxu0 }
 0x3a8   :  { %1022 = vst [vmem:[%s1799_s8 + $0x48] sm:$0xff] %v881_v52  ;;  %1026 = vst [vmem:[%s1799_s8 + $0x68] sm:$0xff] %v967_v2 }
 0x3b4   :  { %v918_v56 = vpop.f32.mrb[8].mxu1 }
 0x3b5   :  { %1015 = vst [vmem:[%s1799_s8 + $0x10] sm:$0xff] %v918_v56  ;;  %v920_v3 = vpop.f32.mrb[9].mxu1 }
 0x3b6   :  { %1016 = vst [vmem:[%s1799_s8 + $0x18] sm:$0xff] %v920_v3  ;;  %v922_v9 = vpop.f32.mrb[10].mxu1 }
 0x3b7   :  { %1023 = vst [vmem:[%s1799_s8 + $0x50] sm:$0xff] %v922_v9  ;;  %v924_v4 = vpop.f32.mrb[11].mxu1 }
 0x3b8   :  { %1024 = vst [vmem:[%s1799_s8 + $0x58] sm:$0xff] %v924_v4 }
 0x3c4   :  { %v1004_v8 = vpop.f32.mrb[12].mxu1 }
 0x3c5   :  { %1019 = vst [vmem:[%s1799_s8 + $0x30] sm:$0xff] %v1004_v8  ;;  %v1006_v13 = vpop.f32.mrb[13].mxu1 }
 0x3c6   :  { %1020 = vst [vmem:[%s1799_s8 + $0x38] sm:$0xff] %v1006_v13  ;;  %v1008_v17 = vpop.f32.mrb[14].mxu1 }
 0x3c7   :  { %1027 = vst [vmem:[%s1799_s8 + $0x70] sm:$0xff] %v1008_v17  ;;  %v1010_v37 = vpop.f32.mrb[15].mxu1 }
 0x3c8   :  { %1028 = vst [vmem:[%s1799_s8 + $0x78] sm:$0xff] %v1010_v37 }

</bundles_post_ra>
